<compile_context>
chip_gen: v5e
topology: v5e:2x2
jax: 0.10.0
libtpu: 0.0.40
codegen_flags: <defaults>
</compile_context>

<pallas_src>
from functools import partial

import jax
import jax.numpy as jnp
from jax.experimental import pallas as pl
from jax.experimental.pallas import tpu as pltpu

TEMPERATURE = 0.5


def part_seg_kernel(x_ref, wsegT_ref, bseg_ref, wcore_ref, bcore_ref,
                    wlin3_ref, blin_ref, out_ref, pooled_acc,
                    *, bt, thw, k, c, hw_total, need_mask, use_vpu_seg):
    hw_i = pl.program_id(1)

    # zero the pooled accumulator at the first hw tile of each batch block
    @pl.when(hw_i == 0)
    def _init():
        pooled_acc[...] = jnp.zeros_like(pooled_acc)

    wsegT = wsegT_ref[...]                    # (K, C)  1/T folded in
    bseg = bseg_ref[...]                      # (K, 1)  1/T folded in

    if need_mask:                             # cdiv tiling of HW: mask the ragged tail
        lane = jax.lax.broadcasted_iota(jnp.int32, (1, thw), 1)
        valid = (hw_i * thw + lane) < hw_total

    for b in range(bt):                       # small, statically unrolled batch block
        xb = x_ref[b]                         # (C, Thw), pixels on lanes
        if need_mask:
            xb = jnp.where(valid, xb, 0.0)    # zeroed pixels contribute 0 to pooling

        # segmenter (1x1 conv): logits (K, Thw).  With tiny C/K the MXU is
        # latency-bound, so use C broadcast-FMAs on the VPU (lane-dense over HW).
        if use_vpu_seg:
            logits = bseg + wsegT[:, 0:1] * xb[0:1, :]
            for cc in range(1, c):
                logits = logits + wsegT[:, cc:cc + 1] * xb[cc:cc + 1, :]
        else:
            logits = jnp.dot(wsegT, xb, preferred_element_type=jnp.float32) + bseg

        # per-pixel softmax over parts: K on sublanes -> cheap sublane row-ops
        z = logits - jnp.max(logits, axis=0, keepdims=True)
        e = jnp.exp(z)
        m = e / jnp.sum(e, axis=0, keepdims=True)                       # (K, Thw)

        # soft-mask pooling: pooled[k, b, c] += sum_p m[k, p] * x[c, p]
        # single MXU contraction over the large, lane-major pixel axis.
        inc = jax.lax.dot_general(m, xb, (((1,), (1,)), ((), ())),
                                  preferred_element_type=jnp.float32)   # (K, C)
        pooled_acc[:, b, :] += inc

    # last hw tile: core linear + classifier for the whole batch block
    @pl.when(hw_i == pl.num_programs(1) - 1)
    def _finalize():
        pooled = pooled_acc[...]              # (K, Bt, C)

        # core model (avgpool + Linear(C->R)) as one batched dot_general over k
        # (1/HW folded into wcore).  No block-diagonal weight, no flatten stores.
        wc = wcore_ref[...]                   # (C, R)
        wcore_b = jnp.broadcast_to(wc[None], (k,) + wc.shape)           # (K, C, R)
        feat = jnp.einsum('kbc,kcr->kbr', pooled, wcore_b,
                          preferred_element_type=jnp.float32) + bcore_ref[...]  # (K,Bt,R)

        # classifier over the flattened (K*R) features: batched dot_general over k
        # plus a sum over parts (== a single depth-K*R contraction).
        outk = jnp.einsum('kbr,krn->kbn', feat, wlin3_ref[...],
                          preferred_element_type=jnp.float32)           # (K, Bt, Npad)
        out = outk[0]
        for kk in range(1, k):
            out = out + outk[kk]
        out_ref[0] = (out + blin_ref[...]).astype(out_ref.dtype)        # (Bt, Npad)


def part_seg_forward(images_nchw, params, *, temperature=TEMPERATURE):
    B, C, H, W = images_nchw.shape
    HW = H * W
    # NCHW -> channels-major (B, C, HW): a FREE reshape, no HBM transpose pass.
    x = images_nchw.reshape(B, C, HW).astype(jnp.float32)

    wseg, bseg = params["wseg"], params["bseg"]          # (C, K), (K,)
    wcore, bcore = params["wcore"], params["bcore"]      # (C, R), (R,)
    wlin, blin = params["wlin"], params["blin"]          # (K*R, N), (N,)
    K = wseg.shape[1]
    R = wcore.shape[1]
    N = wlin.shape[-1]

    # fold 1/temperature into the segmenter affine and 1/HW (avg-pool) into wcore.
    inv_t = jnp.float32(1.0 / temperature)
    wsegT = wseg.astype(jnp.float32).T * inv_t           # (K, C)
    bseg_c = (bseg.astype(jnp.float32) * inv_t).reshape(K, 1)
    wcore_s = wcore.astype(jnp.float32) * jnp.float32(1.0 / HW)
    bcore_r = bcore.astype(jnp.float32).reshape(1, R)

    # lane-dense classifier output: pad N to a multiple of 128, slice afterwards.
    n_pad = int(pl.cdiv(N, 128) * 128)
    wlin3 = jnp.pad(wlin.astype(jnp.float32).reshape(K, R, N),
                    ((0, 0), (0, 0), (0, n_pad - N)))    # (K, R, Npad)
    blin_r = jnp.pad(blin.astype(jnp.float32), ((0, n_pad - N),)).reshape(1, n_pad)

    # ---------------- generation-aware block sizing ----------------
    def rup(v, m):
        return ((v + m - 1) // m) * m

    try:
        info = pltpu.get_tpu_info()
        vmem_cap = int(getattr(info, "vmem_capacity_bytes", 0)) or (64 << 20)
    except Exception:
        vmem_cap = 64 << 20                              # conservative (v7x: 64 MiB / TC)
    try:
        multi_tc = "v7" in jax.devices()[0].device_kind.lower()
    except Exception:
        multi_tc = False

    vmem_limit = min(vmem_cap * 3 // 4, 100 << 20)       # ~96 MiB on v5e/v6e, 48 MiB on v7x

    c_pad = rup(C, 8)

    def x_block_bytes(bt_, thw_):                        # lane-PADDED f32 block footprint
        return bt_ * c_pad * rup(thw_, 128) * 4

    def tile2d(r, cc):                                   # padded 2-D f32 tile bytes
        return rup(r, 8) * rup(cc, 128) * 4

    # grid-invariant weights are still double-buffered by default -> count them 2x.
    fixed = 2 * (tile2d(K, C) + tile2d(K, 1) + tile2d(C, R) + tile2d(1, R)
                 + K * tile2d(R, n_pad) + tile2d(1, n_pad))
    fixed += K * tile2d(8, C) + 2 * tile2d(8, n_pad)     # pooled scratch + out block (bt<=8)
    x_pair_budget = max(int(vmem_limit * 0.8) - fixed, 2 * x_block_bytes(1, 128))

    # hw tile: whole image when it fits, else the largest multiple of 128 lanes
    # whose double-buffered block fits (cdiv grid + in-kernel mask for the tail).
    if 2 * x_block_bytes(1, HW) <= x_pair_budget:
        thw = HW
    else:
        max_thw = (x_pair_budget // (2 * c_pad * 4)) // 128 * 128
        thw = int(max(128, min(max_thw, rup(HW, 128))))
    n_hw = int(pl.cdiv(HW, thw))
    need_mask = (HW % thw) != 0

    # batch block: biggest divisor of B (capped) whose x block fits; keep >=2
    # parallel batch steps only on v7x, where the 2 TensorCores shard the batch.
    bt = 1
    for d in range(1, B + 1):
        if B % d or d > 8:
            continue
        if 2 * x_block_bytes(d, thw) > x_pair_budget:
            continue
        if multi_tc and B >= 2 and (B // d) < 2:
            continue
        bt = d
    n_b = B // bt

    kernel = partial(part_seg_kernel, bt=bt, thw=thw, k=K, c=C,
                     hw_total=HW, need_mask=need_mask, use_vpu_seg=(C <= 8))

    out = pl.pallas_call(
        kernel,
        out_shape=jax.ShapeDtypeStruct((n_b, bt, n_pad), jnp.float32),
        grid=(n_b, n_hw),
        in_specs=[
            pl.BlockSpec((bt, C, thw), lambda b, h: (b, 0, h)),     # images, channels-major
            pl.BlockSpec((K, C), lambda b, h: (0, 0)),              # segmenter weight^T (/T)
            pl.BlockSpec((K, 1), lambda b, h: (0, 0)),              # segmenter bias (/T)
            pl.BlockSpec((C, R), lambda b, h: (0, 0)),              # core weight (/HW)
            pl.BlockSpec((1, R), lambda b, h: (0, 0)),              # core bias
            pl.BlockSpec((K, R, n_pad), lambda b, h: (0, 0, 0)),    # classifier weight
            pl.BlockSpec((1, n_pad), lambda b, h: (0, 0)),          # classifier bias
        ],
        out_specs=pl.BlockSpec((1, bt, n_pad), lambda b, h: (b, 0, 0)),
        scratch_shapes=[pltpu.VMEM((K, bt, C), jnp.float32)],       # pooled accumulator
        compiler_params=pltpu.CompilerParams(
            dimension_semantics=("parallel", "arbitrary"),
            vmem_limit_bytes=int(vmem_limit),
        ),
    )(x, wsegT, bseg_c, wcore_s, bcore_r, wlin3, blin_r)

    return out.reshape(B, n_pad)[:, :N]


def reference_forward(images, params, temperature):
    """Pure-JAX mirror of the PyTorch forward (soft-mask, no group, with bg)."""
    B, C, H, W = images.shape
    K = params["wseg"].shape[1]
    R = params["wcore"].shape[1]
    logits = (jnp.einsum("bchw,ck->bkhw", images, params["wseg"])
              + params["bseg"][None, :, None, None])
    masks = jax.nn.softmax(logits / temperature, axis=1)              # (B, K, H, W)
    masked = images[:, None] * masks[:, :, None]                      # (B, K, C, H, W)
    pooled = masked.mean(axis=(3, 4)).reshape(B * K, C)               # core: avgpool
    feat = pooled @ params["wcore"] + params["bcore"]                 # core: linear
    flat = feat.reshape(B, K * R)
    return flat @ params["wlin"] + params["blin"]


if __name__ == "__main__":
    B, C, H, W = 2, 4, 16, 16
    K, R, N = 8, 32, 10   # seg parts, rep_dim, num_classes

    key = jax.random.PRNGKey(0)
    ks = jax.random.split(key, 7)
    images = jax.random.normal(ks[0], (B, C, H, W), jnp.float32)
    params = dict(
        wseg=jax.random.normal(ks[1], (C, K), jnp.float32) * 0.5,
        bseg=jax.random.normal(ks[2], (K,), jnp.float32) * 0.1,
        wcore=jax.random.normal(ks[3], (C, R), jnp.float32) * 0.5,
        bcore=jax.random.normal(ks[4], (R,), jnp.float32) * 0.1,
        wlin=jax.random.normal(ks[5], (K * R, N), jnp.float32) * 0.1,
        blin=jax.random.normal(ks[6], (N,), jnp.float32) * 0.1,
    )

    out = jax.block_until_ready(part_seg_forward(images, params))
    ref = reference_forward(images, params, TEMPERATURE)
    assert out.shape == (B, N)
    assert jnp.allclose(out, ref, atol=1e-4, rtol=1e-4), (out, ref)
    print("KERNEL_OK")
</pallas_src>

<mosaic_0001>
module attributes {stable_mosaic.version = 11 : i64} {
  func.func @part_seg_kernel(%arg0: i32, %arg1: i32, %arg2: memref<2x4x256xf32, #tpu.memory_space<vmem>>, %arg3: memref<8x4xf32, #tpu.memory_space<vmem>>, %arg4: memref<8x1xf32, #tpu.memory_space<vmem>>, %arg5: memref<4x32xf32, #tpu.memory_space<vmem>>, %arg6: memref<1x32xf32, #tpu.memory_space<vmem>>, %arg7: memref<8x32x128xf32, #tpu.memory_space<vmem>>, %arg8: memref<1x128xf32, #tpu.memory_space<vmem>>, %arg9: memref<1x2x128xf32, #tpu.memory_space<vmem>>, %arg10: memref<8x2x4xf32, #tpu.memory_space<vmem>>) attributes {dimension_semantics = [#tpu.dimension_semantics<parallel>, #tpu.dimension_semantics<arbitrary>], iteration_bounds = array<i64: 1, 1>, scalar_prefetch = 0 : i64, scratch_operands = 1 : i64, tpu.core_type = #tpu.core_type<tc>, window_params = [{transform_indices = @transform_0, window_bounds = array<i64: 2, 4, 256>}, {pipeline_mode = #tpu.pipeline_mode<synchronous>, transform_indices = @transform_1, window_bounds = array<i64: 8, 4>}, {pipeline_mode = #tpu.pipeline_mode<synchronous>, transform_indices = @transform_2, window_bounds = array<i64: 8, 1>}, {pipeline_mode = #tpu.pipeline_mode<synchronous>, transform_indices = @transform_3, window_bounds = array<i64: 4, 32>}, {pipeline_mode = #tpu.pipeline_mode<synchronous>, transform_indices = @transform_4, window_bounds = array<i64: 1, 32>}, {pipeline_mode = #tpu.pipeline_mode<synchronous>, transform_indices = @transform_5, window_bounds = array<i64: 8, 32, 128>}, {pipeline_mode = #tpu.pipeline_mode<synchronous>, transform_indices = @transform_6, window_bounds = array<i64: 1, 128>}, {transform_indices = @transform_7, window_bounds = array<i64: 1, 2, 128>}]} {
    %c0_i32 = arith.constant 0 : i32
    %0 = arith.cmpi eq, %arg1, %c0_i32 : i32
    %1 = arith.extui %0 : i1 to i32
    %c0_i32_0 = arith.constant 0 : i32
    %2 = arith.cmpi ne, %1, %c0_i32_0 : i32
    scf.if %2 {
      %cst_28 = arith.constant 0.000000e+00 : f32
      %94 = vector.broadcast %cst_28 : f32 to vector<8x2x4xf32>
      %c0_29 = arith.constant 0 : index
      %c0_30 = arith.constant 0 : index
      %c0_31 = arith.constant 0 : index
      %95 = vector.load %arg10[%c0_29, %c0_30, %c0_31] : memref<8x2x4xf32, #tpu.memory_space<vmem>>, vector<8x2x4xf32>
      tpu.vector_store %arg10[%c0_29, %c0_30, %c0_31], %94 {strides = array<i32>} : memref<8x2x4xf32, #tpu.memory_space<vmem>>, vector<8x2x4xf32>,
    } else {
    }
    %c0 = arith.constant 0 : index
    %c0_1 = arith.constant 0 : index
    %3 = vector.load %arg3[%c0, %c0_1] : memref<8x4xf32, #tpu.memory_space<vmem>>, vector<8x4xf32>
    %c0_2 = arith.constant 0 : index
    %c0_3 = arith.constant 0 : index
    %4 = vector.load %arg4[%c0_2, %c0_3] : memref<8x1xf32, #tpu.memory_space<vmem>>, vector<8x1xf32>
    %c0_4 = arith.constant 0 : index
    %c0_5 = arith.constant 0 : index
    %c0_6 = arith.constant 0 : index
    %5 = vector.load %arg2[%c0_4, %c0_5, %c0_6] : memref<2x4x256xf32, #tpu.memory_space<vmem>>, vector<1x4x256xf32>
    %6 = vector.shape_cast %5 : vector<1x4x256xf32> to vector<4x256xf32>
    %7 = vector.extract_strided_slice %3 {offsets = [0, 0], sizes = [8, 1], strides = [1, 1]} : vector<8x4xf32> to vector<8x1xf32>
    %8 = vector.extract_strided_slice %6 {offsets = [0, 0], sizes = [1, 256], strides = [1, 1]} : vector<4x256xf32> to vector<1x256xf32>
    %9 = vector.broadcast %7 : vector<8x1xf32> to vector<8x256xf32>
    %10 = vector.broadcast %8 : vector<1x256xf32> to vector<8x256xf32>
    %11 = arith.mulf %9, %10 : vector<8x256xf32>
    %12 = vector.broadcast %4 : vector<8x1xf32> to vector<8x256xf32>
    %13 = arith.addf %12, %11 : vector<8x256xf32>
    %14 = vector.extract_strided_slice %3 {offsets = [0, 1], sizes = [8, 1], strides = [1, 1]} : vector<8x4xf32> to vector<8x1xf32>
    %15 = vector.extract_strided_slice %6 {offsets = [1, 0], sizes = [1, 256], strides = [1, 1]} : vector<4x256xf32> to vector<1x256xf32>
    %16 = vector.broadcast %14 : vector<8x1xf32> to vector<8x256xf32>
    %17 = vector.broadcast %15 : vector<1x256xf32> to vector<8x256xf32>
    %18 = arith.mulf %16, %17 : vector<8x256xf32>
    %19 = arith.addf %13, %18 : vector<8x256xf32>
    %20 = vector.extract_strided_slice %3 {offsets = [0, 2], sizes = [8, 1], strides = [1, 1]} : vector<8x4xf32> to vector<8x1xf32>
    %21 = vector.extract_strided_slice %6 {offsets = [2, 0], sizes = [1, 256], strides = [1, 1]} : vector<4x256xf32> to vector<1x256xf32>
    %22 = vector.broadcast %20 : vector<8x1xf32> to vector<8x256xf32>
    %23 = vector.broadcast %21 : vector<1x256xf32> to vector<8x256xf32>
    %24 = arith.mulf %22, %23 : vector<8x256xf32>
    %25 = arith.addf %19, %24 : vector<8x256xf32>
    %26 = vector.extract_strided_slice %3 {offsets = [0, 3], sizes = [8, 1], strides = [1, 1]} : vector<8x4xf32> to vector<8x1xf32>
    %27 = vector.extract_strided_slice %6 {offsets = [3, 0], sizes = [1, 256], strides = [1, 1]} : vector<4x256xf32> to vector<1x256xf32>
    %28 = vector.broadcast %26 : vector<8x1xf32> to vector<8x256xf32>
    %29 = vector.broadcast %27 : vector<1x256xf32> to vector<8x256xf32>
    %30 = arith.mulf %28, %29 : vector<8x256xf32>
    %31 = arith.addf %25, %30 : vector<8x256xf32>
    %cst = arith.constant dense<0xFF800000> : vector<256xf32>
    %32 = vector.multi_reduction <maximumf>, %31, %cst [0] : vector<8x256xf32> to vector<256xf32>
    %33 = vector.shape_cast %32 : vector<256xf32> to vector<1x256xf32>
    %34 = vector.broadcast %33 : vector<1x256xf32> to vector<8x256xf32>
    %35 = arith.subf %31, %34 : vector<8x256xf32>
    %36 = math.exp %35 : vector<8x256xf32>
    %cst_7 = arith.constant dense<0.000000e+00> : vector<256xf32>
    %37 = vector.multi_reduction <add>, %36, %cst_7 [0] : vector<8x256xf32> to vector<256xf32>
    %38 = vector.shape_cast %37 : vector<256xf32> to vector<1x256xf32>
    %39 = vector.broadcast %38 : vector<1x256xf32> to vector<8x256xf32>
    %40 = arith.divf %36, %39 : vector<8x256xf32>
    %cst_8 = arith.constant dense<0.000000e+00> : vector<8x4xf32>
    %41 = tpu.matmul %40, %6, %cst_8 {dimension_numbers = #tpu.dot_dimension_numbers<[1], [1], [0], [0], [0, 0, 1, 0], [], []>} : vector<8x256xf32>, vector<4x256xf32>, vector<8x4xf32> -> vector<8x4xf32>
    %c0_9 = arith.constant 0 : index
    %c0_10 = arith.constant 0 : index
    %c0_11 = arith.constant 0 : index
    %42 = vector.load %arg10[%c0_9, %c0_10, %c0_11] : memref<8x2x4xf32, #tpu.memory_space<vmem>>, vector<8x1x4xf32>
    %43 = vector.shape_cast %42 : vector<8x1x4xf32> to vector<8x4xf32>
    %44 = arith.addf %43, %41 : vector<8x4xf32>
    %c0_12 = arith.constant 0 : index
    %c0_13 = arith.constant 0 : index
    %c0_14 = arith.constant 0 : index
    %45 = vector.load %arg10[%c0_12, %c0_13, %c0_14] : memref<8x2x4xf32, #tpu.memory_space<vmem>>, vector<8x1x4xf32>
    %46 = vector.shape_cast %45 : vector<8x1x4xf32> to vector<8x4xf32>
    %47 = vector.shape_cast %44 : vector<8x4xf32> to vector<8x1x4xf32>
    tpu.vector_store %arg10[%c0_12, %c0_13, %c0_14], %47 {strides = array<i32>} : memref<8x2x4xf32, #tpu.memory_space<vmem>>, vector<8x1x4xf32>,
    %c1 = arith.constant 1 : index
    %c0_15 = arith.constant 0 : index
    %c0_16 = arith.constant 0 : index
    %48 = vector.load %arg2[%c1, %c0_15, %c0_16] : memref<2x4x256xf32, #tpu.memory_space<vmem>>, vector<1x4x256xf32>
    %49 = vector.shape_cast %48 : vector<1x4x256xf32> to vector<4x256xf32>
    %50 = vector.extract_strided_slice %3 {offsets = [0, 0], sizes = [8, 1], strides = [1, 1]} : vector<8x4xf32> to vector<8x1xf32>
    %51 = vector.extract_strided_slice %49 {offsets = [0, 0], sizes = [1, 256], strides = [1, 1]} : vector<4x256xf32> to vector<1x256xf32>
    %52 = vector.broadcast %50 : vector<8x1xf32> to vector<8x256xf32>
    %53 = vector.broadcast %51 : vector<1x256xf32> to vector<8x256xf32>
    %54 = arith.mulf %52, %53 : vector<8x256xf32>
    %55 = vector.broadcast %4 : vector<8x1xf32> to vector<8x256xf32>
    %56 = arith.addf %55, %54 : vector<8x256xf32>
    %57 = vector.extract_strided_slice %3 {offsets = [0, 1], sizes = [8, 1], strides = [1, 1]} : vector<8x4xf32> to vector<8x1xf32>
    %58 = vector.extract_strided_slice %49 {offsets = [1, 0], sizes = [1, 256], strides = [1, 1]} : vector<4x256xf32> to vector<1x256xf32>
    %59 = vector.broadcast %57 : vector<8x1xf32> to vector<8x256xf32>
    %60 = vector.broadcast %58 : vector<1x256xf32> to vector<8x256xf32>
    %61 = arith.mulf %59, %60 : vector<8x256xf32>
    %62 = arith.addf %56, %61 : vector<8x256xf32>
    %63 = vector.extract_strided_slice %3 {offsets = [0, 2], sizes = [8, 1], strides = [1, 1]} : vector<8x4xf32> to vector<8x1xf32>
    %64 = vector.extract_strided_slice %49 {offsets = [2, 0], sizes = [1, 256], strides = [1, 1]} : vector<4x256xf32> to vector<1x256xf32>
    %65 = vector.broadcast %63 : vector<8x1xf32> to vector<8x256xf32>
    %66 = vector.broadcast %64 : vector<1x256xf32> to vector<8x256xf32>
    %67 = arith.mulf %65, %66 : vector<8x256xf32>
    %68 = arith.addf %62, %67 : vector<8x256xf32>
    %69 = vector.extract_strided_slice %3 {offsets = [0, 3], sizes = [8, 1], strides = [1, 1]} : vector<8x4xf32> to vector<8x1xf32>
    %70 = vector.extract_strided_slice %49 {offsets = [3, 0], sizes = [1, 256], strides = [1, 1]} : vector<4x256xf32> to vector<1x256xf32>
    %71 = vector.broadcast %69 : vector<8x1xf32> to vector<8x256xf32>
    %72 = vector.broadcast %70 : vector<1x256xf32> to vector<8x256xf32>
    %73 = arith.mulf %71, %72 : vector<8x256xf32>
    %74 = arith.addf %68, %73 : vector<8x256xf32>
    %cst_17 = arith.constant dense<0xFF800000> : vector<256xf32>
    %75 = vector.multi_reduction <maximumf>, %74, %cst_17 [0] : vector<8x256xf32> to vector<256xf32>
    %76 = vector.shape_cast %75 : vector<256xf32> to vector<1x256xf32>
    %77 = vector.broadcast %76 : vector<1x256xf32> to vector<8x256xf32>
    %78 = arith.subf %74, %77 : vector<8x256xf32>
    %79 = math.exp %78 : vector<8x256xf32>
    %cst_18 = arith.constant dense<0.000000e+00> : vector<256xf32>
    %80 = vector.multi_reduction <add>, %79, %cst_18 [0] : vector<8x256xf32> to vector<256xf32>
    %81 = vector.shape_cast %80 : vector<256xf32> to vector<1x256xf32>
    %82 = vector.broadcast %81 : vector<1x256xf32> to vector<8x256xf32>
    %83 = arith.divf %79, %82 : vector<8x256xf32>
    %cst_19 = arith.constant dense<0.000000e+00> : vector<8x4xf32>
    %84 = tpu.matmul %83, %49, %cst_19 {dimension_numbers = #tpu.dot_dimension_numbers<[1], [1], [0], [0], [0, 0, 1, 0], [], []>} : vector<8x256xf32>, vector<4x256xf32>, vector<8x4xf32> -> vector<8x4xf32>
    %c0_20 = arith.constant 0 : index
    %c1_21 = arith.constant 1 : index
    %c0_22 = arith.constant 0 : index
    %85 = vector.load %arg10[%c0_20, %c1_21, %c0_22] : memref<8x2x4xf32, #tpu.memory_space<vmem>>, vector<8x1x4xf32>
    %86 = vector.shape_cast %85 : vector<8x1x4xf32> to vector<8x4xf32>
    %87 = arith.addf %86, %84 : vector<8x4xf32>
    %c0_23 = arith.constant 0 : index
    %c1_24 = arith.constant 1 : index
    %c0_25 = arith.constant 0 : index
    %88 = vector.load %arg10[%c0_23, %c1_24, %c0_25] : memref<8x2x4xf32, #tpu.memory_space<vmem>>, vector<8x1x4xf32>
    %89 = vector.shape_cast %88 : vector<8x1x4xf32> to vector<8x4xf32>
    %90 = vector.shape_cast %87 : vector<8x4xf32> to vector<8x1x4xf32>
    tpu.vector_store %arg10[%c0_23, %c1_24, %c0_25], %90 {strides = array<i32>} : memref<8x2x4xf32, #tpu.memory_space<vmem>>, vector<8x1x4xf32>,
    %c0_i32_26 = arith.constant 0 : i32
    %91 = arith.cmpi eq, %arg1, %c0_i32_26 : i32
    %92 = arith.extui %91 : i1 to i32
    %c0_i32_27 = arith.constant 0 : i32
    %93 = arith.cmpi ne, %92, %c0_i32_27 : i32
    scf.if %93 {
      %c0_28 = arith.constant 0 : index
      %c0_29 = arith.constant 0 : index
      %c0_30 = arith.constant 0 : index
      %94 = vector.load %arg10[%c0_28, %c0_29, %c0_30] : memref<8x2x4xf32, #tpu.memory_space<vmem>>, vector<8x2x4xf32>
      %c0_31 = arith.constant 0 : index
      %c0_32 = arith.constant 0 : index
      %95 = vector.load %arg5[%c0_31, %c0_32] : memref<4x32xf32, #tpu.memory_space<vmem>>, vector<4x32xf32>
      %96 = vector.shape_cast %95 : vector<4x32xf32> to vector<1x4x32xf32>
      %97 = vector.shape_cast %96 : vector<1x4x32xf32> to vector<1x4x32xf32>
      %98 = vector.broadcast %97 : vector<1x4x32xf32> to vector<8x4x32xf32>
      "tpu.trace_start"() <{level = 10 : i32, message = "kbc,kcr->kbr"}> : () -> ()
      %cst_33 = arith.constant dense<0.000000e+00> : vector<8x2x32xf32>
      %99 = tpu.matmul %94, %98, %cst_33 {dimension_numbers = #tpu.dot_dimension_numbers<[2], [1], [1], [2], [0, 0, 0, 1, 1, 2], [0], [0]>} : vector<8x2x4xf32>, vector<8x4x32xf32>, vector<8x2x32xf32> -> vector<8x2x32xf32>
      "tpu.trace_stop"() : () -> ()
      %c0_34 = arith.constant 0 : index
      %c0_35 = arith.constant 0 : index
      %100 = vector.load %arg6[%c0_34, %c0_35] : memref<1x32xf32, #tpu.memory_space<vmem>>, vector<1x32xf32>
      %101 = vector.shape_cast %100 : vector<1x32xf32> to vector<1x1x32xf32>
      %102 = vector.broadcast %101 : vector<1x1x32xf32> to vector<8x2x32xf32>
      %103 = arith.addf %99, %102 : vector<8x2x32xf32>
      %c0_36 = arith.constant 0 : index
      %c0_37 = arith.constant 0 : index
      %c0_38 = arith.constant 0 : index
      %104 = vector.load %arg7[%c0_36, %c0_37, %c0_38] : memref<8x32x128xf32, #tpu.memory_space<vmem>>, vector<8x32x128xf32>
      "tpu.trace_start"() <{level = 10 : i32, message = "kbr,krn->kbn"}> : () -> ()
      %cst_39 = arith.constant dense<0.000000e+00> : vector<8x2x128xf32>
      %105 = tpu.matmul %103, %104, %cst_39 {dimension_numbers = #tpu.dot_dimension_numbers<[2], [1], [1], [2], [0, 0, 0, 1, 1, 2], [0], [0]>} : vector<8x2x32xf32>, vector<8x32x128xf32>, vector<8x2x128xf32> -> vector<8x2x128xf32>
      "tpu.trace_stop"() : () -> ()
      %106 = vector.extract_strided_slice %105 {offsets = [0, 0, 0], sizes = [1, 2, 128], strides = [1, 1, 1]} : vector<8x2x128xf32> to vector<1x2x128xf32>
      %107 = vector.shape_cast %106 : vector<1x2x128xf32> to vector<2x128xf32>
      %108 = vector.extract_strided_slice %105 {offsets = [1, 0, 0], sizes = [1, 2, 128], strides = [1, 1, 1]} : vector<8x2x128xf32> to vector<1x2x128xf32>
      %109 = vector.shape_cast %108 : vector<1x2x128xf32> to vector<2x128xf32>
      %110 = arith.addf %107, %109 : vector<2x128xf32>
      %111 = vector.extract_strided_slice %105 {offsets = [2, 0, 0], sizes = [1, 2, 128], strides = [1, 1, 1]} : vector<8x2x128xf32> to vector<1x2x128xf32>
      %112 = vector.shape_cast %111 : vector<1x2x128xf32> to vector<2x128xf32>
      %113 = arith.addf %110, %112 : vector<2x128xf32>
      %114 = vector.extract_strided_slice %105 {offsets = [3, 0, 0], sizes = [1, 2, 128], strides = [1, 1, 1]} : vector<8x2x128xf32> to vector<1x2x128xf32>
      %115 = vector.shape_cast %114 : vector<1x2x128xf32> to vector<2x128xf32>
      %116 = arith.addf %113, %115 : vector<2x128xf32>
      %117 = vector.extract_strided_slice %105 {offsets = [4, 0, 0], sizes = [1, 2, 128], strides = [1, 1, 1]} : vector<8x2x128xf32> to vector<1x2x128xf32>
      %118 = vector.shape_cast %117 : vector<1x2x128xf32> to vector<2x128xf32>
      %119 = arith.addf %116, %118 : vector<2x128xf32>
      %120 = vector.extract_strided_slice %105 {offsets = [5, 0, 0], sizes = [1, 2, 128], strides = [1, 1, 1]} : vector<8x2x128xf32> to vector<1x2x128xf32>
      %121 = vector.shape_cast %120 : vector<1x2x128xf32> to vector<2x128xf32>
      %122 = arith.addf %119, %121 : vector<2x128xf32>
      %123 = vector.extract_strided_slice %105 {offsets = [6, 0, 0], sizes = [1, 2, 128], strides = [1, 1, 1]} : vector<8x2x128xf32> to vector<1x2x128xf32>
      %124 = vector.shape_cast %123 : vector<1x2x128xf32> to vector<2x128xf32>
      %125 = arith.addf %122, %124 : vector<2x128xf32>
      %126 = vector.extract_strided_slice %105 {offsets = [7, 0, 0], sizes = [1, 2, 128], strides = [1, 1, 1]} : vector<8x2x128xf32> to vector<1x2x128xf32>
      %127 = vector.shape_cast %126 : vector<1x2x128xf32> to vector<2x128xf32>
      %128 = arith.addf %125, %127 : vector<2x128xf32>
      %c0_40 = arith.constant 0 : index
      %c0_41 = arith.constant 0 : index
      %129 = vector.load %arg8[%c0_40, %c0_41] : memref<1x128xf32, #tpu.memory_space<vmem>>, vector<1x128xf32>
      %130 = vector.broadcast %129 : vector<1x128xf32> to vector<2x128xf32>
      %131 = arith.addf %128, %130 : vector<2x128xf32>
      %c0_42 = arith.constant 0 : index
      %c0_43 = arith.constant 0 : index
      %c0_44 = arith.constant 0 : index
      %132 = vector.load %arg9[%c0_42, %c0_43, %c0_44] : memref<1x2x128xf32, #tpu.memory_space<vmem>>, vector<1x2x128xf32>
      %133 = vector.shape_cast %132 : vector<1x2x128xf32> to vector<2x128xf32>
      %134 = vector.shape_cast %131 : vector<2x128xf32> to vector<1x2x128xf32>
      tpu.vector_store %arg9[%c0_42, %c0_43, %c0_44], %134 {strides = array<i32>} : memref<1x2x128xf32, #tpu.memory_space<vmem>>, vector<1x2x128xf32>,
    } else {
    }
    return
  }
  func.func @transform_0(%arg0: i32, %arg1: i32) -> (i32, i32, i32) {
    %c0_i32 = arith.constant 0 : i32
    %c0_i32_0 = arith.constant 0 : i32
    return %arg0, %c0_i32, %arg1 : i32, i32, i32
  }
  func.func @transform_1(%arg0: i32, %arg1: i32) -> (i32, i32) {
    %c0_i32 = arith.constant 0 : i32
    %c0_i32_0 = arith.constant 0 : i32
    %c0_i32_1 = arith.constant 0 : i32
    return %c0_i32, %c0_i32_0 : i32, i32
  }
  func.func @transform_2(%arg0: i32, %arg1: i32) -> (i32, i32) {
    %c0_i32 = arith.constant 0 : i32
    %c0_i32_0 = arith.constant 0 : i32
    %c0_i32_1 = arith.constant 0 : i32
    return %c0_i32, %c0_i32_0 : i32, i32
  }
  func.func @transform_3(%arg0: i32, %arg1: i32) -> (i32, i32) {
    %c0_i32 = arith.constant 0 : i32
    %c0_i32_0 = arith.constant 0 : i32
    %c0_i32_1 = arith.constant 0 : i32
    return %c0_i32, %c0_i32_0 : i32, i32
  }
  func.func @transform_4(%arg0: i32, %arg1: i32) -> (i32, i32) {
    %c0_i32 = arith.constant 0 : i32
    %c0_i32_0 = arith.constant 0 : i32
    %c0_i32_1 = arith.constant 0 : i32
    return %c0_i32, %c0_i32_0 : i32, i32
  }
  func.func @transform_5(%arg0: i32, %arg1: i32) -> (i32, i32, i32) {
    %c0_i32 = arith.constant 0 : i32
    %c0_i32_0 = arith.constant 0 : i32
    %c0_i32_1 = arith.constant 0 : i32
    %c0_i32_2 = arith.constant 0 : i32
    return %c0_i32, %c0_i32_0, %c0_i32_1 : i32, i32, i32
  }
  func.func @transform_6(%arg0: i32, %arg1: i32) -> (i32, i32) {
    %c0_i32 = arith.constant 0 : i32
    %c0_i32_0 = arith.constant 0 : i32
    %c0_i32_1 = arith.constant 0 : i32
    return %c0_i32, %c0_i32_0 : i32, i32
  }
  func.func @transform_7(%arg0: i32, %arg1: i32) -> (i32, i32, i32) {
    %c0_i32 = arith.constant 0 : i32
    %c0_i32_0 = arith.constant 0 : i32
    %c0_i32_1 = arith.constant 0 : i32
    return %arg0, %c0_i32, %c0_i32_0 : i32, i32, i32
  }
}

</mosaic_0001>

<bundles_post_ra>
// kernel: tpu_custom_call.1
= control target key start
LH: loop header
LB: loop body
LE: loop exit
PB: predicated region body
PF: predicated region fallthrough
CT: control target
= control target key end

     0   :  { %12 = vsyncpa [#allocation4], 0  ;;  %s1159_s0 = inlined_call_operand.vmem [shape: f32[2,4,256], index: 0, kind: input, shape index: {}]   ;;  %s1160_s1 = inlined_call_operand.vmem [shape: f32[8,4], index: 1, kind: input, shape index: {}]   ;;  %s1161_s2 = inlined_call_operand.vmem [shape: f32[8,1], index: 2, kind: input, shape index: {}]   ;;  %s1162_s3 = inlined_call_operand.vmem [shape: f32[4,32], index: 3, kind: input, shape index: {}]   ;;  %s1163_s4 = inlined_call_operand.vmem [shape: f32[1,32], index: 4, kind: input, shape index: {}]   ;;  %s1164_s5 = inlined_call_operand.hbm [shape: f32[8,32,128], index: 5, kind: input, shape index: {}]   ;;  %s1165_s6 = inlined_call_operand.vmem [shape: f32[1,128], index: 6, kind: input, shape index: {}]   ;;  %s1166_s7 = inlined_call_operand.hbm [shape: f32[1,2,128], index: 7, kind: output, shape index: {}]  }
   0x1   :  { %13 = vsyncpa [#allocation5], 0  ;;  %s28_s26 = sshll.u32 %s1164_s5, 4  ;;  %s1017_s27 = smov [#allocation3]   ;;  %s29_s26 = int_to_ptr.hbm [resolvable:$true] %s28_s26 }
   0x2   :  { %s30_s28 = sshll.u32 %s1017_s27, 4  ;;  %s1018_s29 = smov 128   ;;  %s31_s28 = int_to_ptr.vmem [resolvable:$true] %s30_s28 }
   0x3   :  { %s1019_s30 = smov 8  }
   0x4   :  { %36 = dma.hbm_to_vmem [thread:$0]  %s29_s26, 4096, %s31_s28, [#allocation4], %s1018_s29, %s1018_s29, %s1019_s30  }
   0x5   :  { %1013 = dma.done.wait [#allocation4], 4096  }
   0x6   :  { %1014 = vsyncadd [#allocation4], 4294963200  ;;  %v1020_v0 = vmov 0   ;;  %v1021_v1 = vmov 1   ;;  %v1022_v2 = vmov 3   ;;  %v56_v3 = vld [vmem:[%s1160_s1] sm:$0xff] }
   0x7   :  { %942 = vset.pattern.permute.xlu0 %v1020_v0  ;;  %943 = vset.pattern.permute.xlu1 %v1021_v1  ;;  %v57_v4 = vld [vmem:[%s1161_s2] sm:$0xff]  ;;  %v1023_v5 = vmov 2   ;;  %v908_v9 = vld [vmem:[%s1159_s0 + $0x8] sm:$0xff]  ;;  %s1025_s16 = smov [#allocation6]   ;;  %s898_s20 = sshll.u32 %s1166_s7, 4  ;;  %s899_s20 = int_to_ptr.hbm [resolvable:$true] %s898_s20 }
   0x8   :  { %945 = vset.pattern.permute.xlu2 %v1022_v2  ;;  %61 = vperm.xlu0 %942, %v56_v3   ;;  %v58_v6 = vld [vmem:[%s1159_s0] sm:$0xff]  ;;  %v301_v14 = vperm.slane %v908_v9, 3  ;;  %v302_v15 = vperm.slane %v908_v9, 7  ;;  %v281_v16 = vperm.slane %v908_v9, 1  ;;  %v282_v17 = vperm.slane %v908_v9, 5  ;;  %s896_s17 = sshll.u32 %s1025_s16, 4  ;;  %s897_s17 = int_to_ptr.vmem [resolvable:$true] %s896_s17 }
   0x9   :  { %81 = vperm.xlu1 %943, %v56_v3   ;;  %109 = vperm.xlu2 %945, %v56_v3   ;;  %182 = vst [vmem:[#allocation1] ss:$2 sm:$0xff] %v58_v6  ;;  %v84_v7 = vperm.slane %v58_v6, 1  ;;  %v85_v8 = vperm.slane %v58_v6, 5  ;;  %v65_v10 = vperm.slane %v58_v6, 0  ;;  %v66_v11 = vperm.slane %v58_v6, 4 }
   0xa   :  { %v112_v12 = vperm.slane %v58_v6, 3  ;;  %v113_v13 = vperm.slane %v58_v6, 7  ;;  %v271_v18 = vperm.slane %v908_v9, 0  ;;  %v272_v19 = vperm.slane %v908_v9, 4 }
   0xb   :  { %v88_v21 = vperm.slane %v84_v7, 1  ;;  %v89_v22 = vperm.slane %v85_v8, 1  ;;  %v69_v24 = vperm.slane %v65_v10, 0  ;;  %v70_v25 = vperm.slane %v66_v11, 0 }
   0xc   :  { %v98_v26 = vperm.slane %v58_v6, 2  ;;  %v99_v27 = vperm.slane %v58_v6, 6  ;;  %v291_v28 = vperm.slane %v908_v9, 2  ;;  %v292_v29 = vperm.slane %v908_v9, 6 }
   0xd   :  { %v116_v30 = vperm.slane %v112_v12, 3  ;;  %v117_v31 = vperm.slane %v113_v13, 3  ;;  %v305_v32 = vperm.slane %v301_v14, 3  ;;  %v306_v33 = vperm.slane %v302_v15, 3 }
   0xe   :  { %v285_v34 = vperm.slane %v281_v16, 1  ;;  %v286_v35 = vperm.slane %v282_v17, 1  ;;  %v275_v36 = vperm.slane %v271_v18, 0  ;;  %v276_v37 = vperm.slane %v272_v19, 0 }
   0xf   :  { %v102_v41 = vperm.slane %v98_v26, 2  ;;  %v103_v42 = vperm.slane %v99_v27, 2  ;;  %v295_v43 = vperm.slane %v291_v28, 2  ;;  %v296_v44 = vperm.slane %v292_v29, 2 }
  0x10   :  { %75 = vperm.xlu0 %942, %v57_v4   ;;  %v183_v39 = vld.sshfl [vmem:[#allocation1] sm:$0xff pattern:$0x75316420]  ;;  %v184_v40 = vld.sshfl [vmem:[#allocation1 + $0x8] sm:$0xff pattern:$0x75316420] }
  0x11   :  { %944 = vset.pattern.permute.xlu1 %v1023_v5  ;;  %202 = vmatpush.xpose.msra.mxu0 %v183_v39  ;;  %371 = vst [vmem:[#allocation1] ss:$2 sm:$0xff] %v908_v9 }
  0x12   :  { %95 = vperm.xlu1 %944, %v56_v3   ;;  %222 = vmatpush.xpose.msra.mxu1 %v184_v40 }
  0x18   :  { %946 = vset.pattern.permute.xlu0 %v1022_v2  ;;  %v372_v7 = vld.sshfl [vmem:[#allocation1] sm:$0xff pattern:$0x75316420]  ;;  %v373_v8 = vld.sshfl [vmem:[#allocation1 + $0x8] sm:$0xff pattern:$0x75316420] }
  0x19   :  { %391 = vmatpush.xpose.msra.mxu2 %v372_v7  ;;  %411 = vmatpush.xpose.msra.mxu3 %v373_v8 }
  0x63   :  { %v110_v38 = vpop.permute.xlu2 %109 }
  0x64   :  { %v118_v45 = vmul.f32 %v116_v30, %v110_v38  ;;  %v119_v46 = vmul.f32 %v117_v31, %v110_v38  ;;  %v307_v47 = vmul.f32 %v305_v32, %v110_v38  ;;  %v308_v48 = vmul.f32 %v306_v33, %v110_v38 }
  0x7a   :  { %v62_v20 = vpop.permute.xlu0 %61 }
  0x7b   :  { %v82_v23 = vpop.permute.xlu1 %81  ;;  %v71_v49 = vmul.f32 %v69_v24, %v62_v20  ;;  %v72_v50 = vmul.f32 %v70_v25, %v62_v20  ;;  %v277_v51 = vmul.f32 %v275_v36, %v62_v20  ;;  %v278_v52 = vmul.f32 %v276_v37, %v62_v20 }
  0x7c   :  { %v90_v53 = vmul.f32 %v88_v21, %v82_v23  ;;  %v91_v54 = vmul.f32 %v89_v22, %v82_v23  ;;  %v287_v55 = vmul.f32 %v285_v34, %v82_v23  ;;  %v288_v56 = vmul.f32 %v286_v35, %v82_v23 }
  0x82   :  { %v76_v57 = vpop.permute.xlu0 %75 }
  0x83   :  { %v78_v58 = vadd.f32 %v76_v57, %v71_v49  ;;  %v79_v59 = vadd.f32 %v76_v57, %v72_v50  ;;  %v279_v60 = vadd.f32 %v277_v51, %v76_v57  ;;  %v280_v61 = vadd.f32 %v278_v52, %v76_v57 }
  0x84   :  { %v96_v62 = vpop.permute.xlu1 %95 }
  0x85   :  { %v104_v63 = vmul.f32 %v102_v41, %v96_v62  ;;  %v105_v0 = vmul.f32 %v103_v42, %v96_v62  ;;  %v297_v1 = vmul.f32 %v295_v43, %v96_v62  ;;  %v298_v2 = vmul.f32 %v296_v44, %v96_v62 }
  0x86   :  { %v92_v3 = vadd.f32 %v90_v53, %v78_v58  ;;  %v93_v4 = vadd.f32 %v91_v54, %v79_v59  ;;  %v289_v5 = vadd.f32 %v287_v55, %v279_v60  ;;  %v290_v6 = vadd.f32 %v288_v56, %v280_v61 }
  0x88   :  { %v106_v9 = vadd.f32 %v104_v63, %v92_v3  ;;  %v107_v10 = vadd.f32 %v105_v0, %v93_v4  ;;  %v299_v11 = vadd.f32 %v297_v1, %v289_v5  ;;  %v300_v12 = vadd.f32 %v298_v2, %v290_v6 }
  0x8a   :  { %v120_v13 = vadd.f32 %v118_v45, %v106_v9  ;;  %v121_v14 = vadd.f32 %v119_v46, %v107_v10  ;;  %v309_v15 = vadd.f32 %v307_v47, %v299_v11  ;;  %v310_v16 = vadd.f32 %v308_v48, %v300_v12 }
  0x8c   :  { %v122_v17 = vrot.slane %v120_v13, 4  ;;  %v128_v18 = vrot.slane %v121_v14, 4  ;;  %v311_v19 = vrot.slane %v309_v15, 4  ;;  %v317_v20 = vrot.slane %v310_v16, 4 }
  0x8e   :  { %v123_v21 = vmax.f32 %v120_v13, %v122_v17  ;;  %v129_v22 = vmax.f32 %v121_v14, %v128_v18  ;;  %v312_v23 = vmax.f32 %v309_v15, %v311_v19  ;;  %v318_v24 = vmax.f32 %v310_v16, %v317_v20 }
  0x90   :  { %v124_v25 = vrot.slane %v123_v21, 2  ;;  %v130_v26 = vrot.slane %v129_v22, 2  ;;  %v313_v27 = vrot.slane %v312_v23, 2  ;;  %v319_v28 = vrot.slane %v318_v24, 2 }
  0x92   :  { %v125_v29 = vmax.f32 %v123_v21, %v124_v25  ;;  %v131_v30 = vmax.f32 %v129_v22, %v130_v26  ;;  %v314_v31 = vmax.f32 %v312_v23, %v313_v27  ;;  %v320_v32 = vmax.f32 %v318_v24, %v319_v28 }
  0x94   :  { %v126_v33 = vrot.slane %v125_v29, 1  ;;  %v132_v34 = vrot.slane %v131_v30, 1  ;;  %v315_v35 = vrot.slane %v314_v31, 1  ;;  %v321_v36 = vrot.slane %v320_v32, 1 }
  0x96   :  { %v127_v37 = vmax.f32 %v125_v29, %v126_v33  ;;  %v133_v38 = vmax.f32 %v131_v30, %v132_v34  ;;  %v316_v39 = vmax.f32 %v314_v31, %v315_v35  ;;  %v322_v40 = vmax.f32 %v320_v32, %v321_v36 }
  0x98   :  { %v134_v41 = vsub.f32 %v120_v13, %v127_v37  ;;  %v135_v42 = vsub.f32 %v121_v14, %v133_v38  ;;  %v323_v43 = vsub.f32 %v309_v15, %v316_v39  ;;  %v324_v44 = vsub.f32 %v310_v16, %v322_v40 }
  0x9a   :  { %v136_v45 = vmul.f32 1.442695, %v134_v41  ;;  %v138_v46 = vmul.f32 1.442695, %v135_v42  ;;  %v325_v47 = vmul.f32 1.442695, %v323_v43 }
  0x9b   :  { %v327_v48 = vmul.f32 1.442695, %v324_v44 }
  0x9c   :  { %949 = vpow2.f32 %v136_v45 }
  0x9d   :  { %951 = vpow2.f32 %v138_v46 }
  0x9e   :  { %953 = vpow2.f32 %v325_v47 }
  0x9f   :  { %955 = vpow2.f32 %v327_v48 }
  0xa2   :  { %v1081_v49 = vpop.eup %949 }
  0xa3   :  { %v1083_v50 = vpop.eup %951  ;;  %v140_v51 = vrot.slane %v1081_v49, 4 }
  0xa4   :  { %v1086_v52 = vpop.eup %953  ;;  %v146_v53 = vrot.slane %v1083_v50, 4 }
  0xa5   :  { %v1089_v54 = vpop.eup %955  ;;  %v141_v55 = vadd.f32 %v1081_v49, %v140_v51  ;;  %v329_v56 = vrot.slane %v1086_v52, 4 }
  0xa6   :  { %v147_v57 = vadd.f32 %v1083_v50, %v146_v53  ;;  %v335_v58 = vrot.slane %v1089_v54, 4 }
  0xa7   :  { %v142_v59 = vrot.slane %v141_v55, 2  ;;  %v330_v60 = vadd.f32 %v1086_v52, %v329_v56 }
  0xa8   :  { %v148_v61 = vrot.slane %v147_v57, 2  ;;  %v336_v62 = vadd.f32 %v1089_v54, %v335_v58 }
  0xa9   :  { %v143_v63 = vadd.f32 %v142_v59, %v141_v55  ;;  %v331_v0 = vrot.slane %v330_v60, 2 }
  0xaa   :  { %v149_v1 = vadd.f32 %v148_v61, %v147_v57  ;;  %v337_v2 = vrot.slane %v336_v62, 2 }
  0xab   :  { %v144_v3 = vrot.slane %v143_v63, 1  ;;  %v332_v4 = vadd.f32 %v331_v0, %v330_v60 }
  0xac   :  { %v150_v5 = vrot.slane %v149_v1, 1  ;;  %v338_v6 = vadd.f32 %v337_v2, %v336_v62  ;;  %v467_v62 = vld [vmem:[%s1162_s3] sm:$0xf] }
  0xad   :  { %v145_v7 = vadd.f32 %v144_v3, %v143_v63  ;;  %v333_v8 = vrot.slane %v332_v4, 1 }
  0xae   :  { %v151_v9 = vadd.f32 %v150_v5, %v149_v1  ;;  %v339_v10 = vrot.slane %v338_v6, 1 }
  0xaf   :  { %957 = vrcp.f32 %v145_v7  ;;  %v334_v11 = vadd.f32 %v333_v8, %v332_v4  ;;  %v161_v14 = vand.u32 2147483647, %v145_v7  ;;  %v163_v17 = vand.u32 2147483648, %v145_v7 }
  0xb0   :  { %959 = vrcp.f32 %v151_v9  ;;  %v340_v12 = vadd.f32 %v339_v10, %v338_v6  ;;  %v176_v19 = vand.u32 2147483647, %v151_v9  ;;  %v178_v21 = vand.u32 2147483648, %v151_v9 }
  0xb1   :  { %961 = vrcp.f32 %v334_v11  ;;  %vm157_vm0 = vweird.f32 %v145_v7  ;;  %vm1097_vm1 = vcmp.eq.f32.partialorder %v161_v14, 8.507059e+37  ;;  %vm172_vm2 = vweird.f32 %v151_v9 }
  0xb2   :  { %963 = vrcp.f32 %v340_v12  ;;  %v164_v27 = vor.u32 1.1754944e-38, %v163_v17  ;;  %vm1101_vm5 = vcmp.eq.f32.partialorder %v176_v19, 8.507059e+37  ;;  %v179_v33 = vor.u32 1.1754944e-38, %v178_v21 }
  0xb3   :  { %v350_v35 = vand.u32 2147483647, %v334_v11  ;;  %v352_v37 = vand.u32 2147483648, %v334_v11  ;;  %v365_v39 = vand.u32 2147483647, %v340_v12  ;;  %v367_v42 = vand.u32 2147483648, %v340_v12 }
  0xb4   :  { %vm346_vm10 = vweird.f32 %v334_v11  ;;  %vm361_vm12 = vweird.f32 %v340_v12 }
  0xb5   :  { %v958_v13 = vpop.eup %957  ;;  %v353_v53 = vor.u32 1.1754944e-38, %v352_v37  ;;  %vm351_vm13 = vcmp.eq.f32.partialorder %v350_v35, 8.507059e+37  ;;  %v368_v57 = vor.u32 1.1754944e-38, %v367_v42  ;;  %vm366_vm15 = vcmp.eq.f32.partialorder %v365_v39, 8.507059e+37 }
  0xb6   :  { %v960_v15 = vpop.eup %959  ;;  %v153_v16 = vmul.f32 %v958_v13, %v145_v7  ;;  %vm158_vm3 = vweird.f32 %v958_v13 }
  0xb7   :  { %v168_v18 = vmul.f32 %v960_v15, %v151_v9  ;;  %v962_v22 = vpop.eup %961  ;;  %vm173_vm4 = vweird.f32 %v960_v15  ;;  %vm159_vm6 = vmor %vm157_vm0, %vm158_vm3  ;;  %vm47_vm0 = vcmask 25600   ;;  %vm472_vm3 = vcmask 31744  }
  0xb8   :  { %v154_v20 = vsub.f32 1.0, %v153_v16  ;;  %v964_v25 = vpop.eup %963  ;;  %v342_v28 = vmul.f32 %v962_v22, %v334_v11  ;;  %vm174_vm7 = vmor %vm172_vm2, %vm173_vm4  ;;  %vm347_vm8 = vweird.f32 %v962_v22  ;;  %vm259_vm2 = vcmask 24576  }
  0xb9   :  { %v169_v24 = vsub.f32 1.0, %v168_v18  ;;  %v357_v31 = vmul.f32 %v964_v25, %v340_v12  ;;  %vm362_vm9 = vweird.f32 %v964_v25  ;;  %vm348_vm11 = vmor %vm346_vm10, %vm347_vm8  ;;  %vm693_vm4 = vcmask 261120  }
  0xba   :  { %v155_v26 = vmul.f32 %v958_v13, %v154_v20  ;;  %v343_v34 = vsub.f32 1.0, %v342_v28  ;;  %vm363_vm14 = vmor %vm361_vm12, %vm362_vm9 }
  0xbb   :  { %v170_v29 = vmul.f32 %v960_v15, %v169_v24  ;;  %v358_v38 = vsub.f32 1.0, %v357_v31 }
  0xbc   :  { %v156_v32 = vadd.f32 %v958_v13, %v155_v26  ;;  %v344_v41 = vmul.f32 %v962_v22, %v343_v34 }
  0xbd   :  { %v171_v36 = vadd.f32 %v960_v15, %v170_v29  ;;  %v359_v45 = vmul.f32 %v964_v25, %v358_v38 }
  0xbe   :  { %v160_v40 = vsel %vm159_vm6, %v958_v13, %v156_v32  ;;  %v345_v48 = vadd.f32 %v962_v22, %v344_v41 }
  0xbf   :  { %v165_v43 = vsel %vm1097_vm1, %v164_v27, %v160_v40  ;;  %v175_v44 = vsel %vm174_vm7, %v960_v15, %v171_v36  ;;  %v360_v55 = vadd.f32 %v964_v25, %v359_v45  ;;  %vm476_vm1 = vcmask 1043456  }
  0xc0   :  { %v166_v46 = vmul.f32 %v1081_v49, %v165_v43  ;;  %v180_v47 = vsel %vm1101_vm5, %v179_v33, %v175_v44  ;;  %v349_v56 = vsel %vm348_vm11, %v962_v22, %v345_v48  ;;  %913 = vmatpush.msk.msrb.mxu2 %vm476_vm1, %v467_v62  ;;  %915 = vmatpush.msk.msrb.mxu3 %vm476_vm1, %v467_v62 }
  0xc1   :  { %v181_v51 = vmul.f32 %v1083_v50, %v180_v47  ;;  %v354_v58 = vsel %vm351_vm13, %v353_v53, %v349_v56  ;;  %v364_v59 = vsel %vm363_vm14, %v964_v25, %v360_v55  ;;  %v1024_v50 = vmov 0.0   ;;  %909 = vmatpush.msk.msrb.mxu0 %vm476_vm1, %v467_v62  ;;  %911 = vmatpush.msk.msrb.mxu1 %vm476_vm1, %v467_v62  ;;  %v668_v55 = vld [vmem:[#allocation3 + $0x38] sm:$0xff] }
  0xc2   :  { %203 = vmatmul.f32.vlgmr.msra.gmra.mxu0 %v166_v46  ;;  %v355_v49 = vmul.f32 %v1086_v52, %v354_v58  ;;  %v369_v60 = vsel %vm366_vm15, %v368_v57, %v364_v59  ;;  %48 = vst.msk [vmem:[#allocation2] sm:$0x3] %vm47_vm0, %v1024_v50  ;;  %v663_v57 = vld [vmem:[#allocation3 + $0x10] sm:$0xff] }
  0xc3   :  { %223 = vmatmul.f32.vlgmr.msra.gmra.mxu1 %v181_v51  ;;  %v370_v61 = vmul.f32 %v1089_v54, %v369_v60  ;;  %49 = vst.msk [vmem:[#allocation2 + $0x2] sm:$0x3] %vm47_vm0, %v1024_v50  ;;  %917 = vmatpush.msk.msra.mxu0 %vm476_vm1, %v467_v62  ;;  %v664_v51 = vld [vmem:[#allocation3 + $0x18] sm:$0xff] }
  0xc4   :  { %392 = vmatmul.f32.vlgmr.msra.gmra.mxu2 %v355_v49  ;;  %50 = vst.msk [vmem:[#allocation2 + $0x4] sm:$0x3] %vm47_vm0, %v1024_v50  ;;  %919 = vmatpush.msk.msra.mxu1 %vm476_vm1, %v467_v62 }
  0xc5   :  { %412 = vmatmul.f32.vlgmr.msra.gmra.mxu3 %v370_v61  ;;  %51 = vst.msk [vmem:[#allocation2 + $0x6] sm:$0x3] %vm47_vm0, %v1024_v50  ;;  %921 = vmatpush.msk.msra.mxu2 %vm476_vm1, %v467_v62 }
  0xc6   :  { %52 = vst.msk [vmem:[#allocation2 + $0x8] sm:$0x3] %vm47_vm0, %v1024_v50  ;;  %923 = vmatpush.msk.msra.mxu3 %vm476_vm1, %v467_v62  ;;  %v662_v62 = vld [vmem:[#allocation3 + $0x8] sm:$0xff] }
  0xc7   :  { %53 = vst.msk [vmem:[#allocation2 + $0xa] sm:$0x3] %vm47_vm0, %v1024_v50 }
  0xc8   :  { %54 = vst.msk [vmem:[#allocation2 + $0xc] sm:$0x3] %vm47_vm0, %v1024_v50 }
  0xc9   :  { %55 = vst.msk [vmem:[#allocation2 + $0xe] sm:$0x3] %vm47_vm0, %v1024_v50  ;;  %v227_v0 = vld [vmem:[#allocation2] sm:$0x1]  ;;  %v416_v25 = vld [vmem:[#allocation2 + $0x1] sm:$0x1] }
  0xca   :  { %v228_v1 = vld [vmem:[#allocation2 + $0x2] sm:$0x1]  ;;  %v417_v27 = vld [vmem:[#allocation2 + $0x3] sm:$0x1] }
  0xcb   :  { %v229_v2 = vld [vmem:[#allocation2 + $0x4] sm:$0x1]  ;;  %v418_v28 = vld [vmem:[#allocation2 + $0x5] sm:$0x1] }
  0xcc   :  { %v230_v3 = vld [vmem:[#allocation2 + $0x6] sm:$0x1]  ;;  %v419_v29 = vld [vmem:[#allocation2 + $0x7] sm:$0x1] }
  0xcd   :  { %v231_v4 = vld [vmem:[#allocation2 + $0x8] sm:$0x1]  ;;  %v420_v30 = vld [vmem:[#allocation2 + $0x9] sm:$0x1] }
  0xce   :  { %v232_v9 = vld [vmem:[#allocation2 + $0xa] sm:$0x1]  ;;  %v421_v35 = vld [vmem:[#allocation2 + $0xb] sm:$0x1] }
  0xcf   :  { %v233_v13 = vld [vmem:[#allocation2 + $0xc] sm:$0x1]  ;;  %v422_v39 = vld [vmem:[#allocation2 + $0xd] sm:$0x1] }
  0xd0   :  { %v234_v18 = vld [vmem:[#allocation2 + $0xe] sm:$0x1]  ;;  %v423_v44 = vld [vmem:[#allocation2 + $0xf] sm:$0x1] }
 0x13f   :  { %v204_v52 = vpop.f32.mrf.mxu0 }
 0x140   :  { %v224_v54 = vpop.f32.mrf.mxu1 }
 0x141   :  { %v225_v63 = vadd.f32 %v224_v54, %v204_v52  ;;  %v667_v52 = vld [vmem:[#allocation3 + $0x30] sm:$0xff]  ;;  %v661_v54 = vld [vmem:[#allocation3] sm:$0xff] }
 0x143   :  { %v236_v5 = vrot.slane %v225_v63, 1  ;;  %v237_v6 = vrot.slane %v225_v63, 2  ;;  %v238_v7 = vrot.slane %v225_v63, 3  ;;  %v239_v8 = vrot.slane %v225_v63, 4 }
 0x144   :  { %v240_v10 = vrot.slane %v225_v63, 5  ;;  %v241_v11 = vrot.slane %v225_v63, 6  ;;  %v251_v12 = vadd.f32 %v227_v0, %v225_v63  ;;  %v242_v14 = vrot.slane %v225_v63, 7  ;;  %v666_v63 = vld [vmem:[#allocation3 + $0x28] sm:$0xff]  ;;  %v672_v0 = vld [vmem:[#allocation3 + $0x58] sm:$0xff] }
 0x145   :  { %v252_v15 = vadd.f32 %v236_v5, %v228_v1  ;;  %v253_v16 = vadd.f32 %v237_v6, %v229_v2  ;;  %v254_v17 = vadd.f32 %v238_v7, %v230_v3  ;;  %v255_v19 = vadd.f32 %v239_v8, %v231_v4  ;;  %v665_v1 = vld [vmem:[#allocation3 + $0x20] sm:$0xff]  ;;  %v676_v2 = vld [vmem:[#allocation3 + $0x78] sm:$0xff]  ;;  %v671_v4 = vld [vmem:[#allocation3 + $0x50] sm:$0xff] }
 0x146   :  { %260 = vst.msk [vmem:[#allocation2] sm:$0x1] %vm259_vm2, %v251_v12  ;;  %v256_v20 = vadd.f32 %v240_v10, %v232_v9  ;;  %v257_v21 = vadd.f32 %v241_v11, %v233_v13  ;;  %v258_v22 = vadd.f32 %v242_v14, %v234_v18  ;;  %v680_v3 = vld [vmem:[#allocation3 + $0x98] sm:$0xff]  ;;  %v675_v5 = vld [vmem:[#allocation3 + $0x70] sm:$0xff]  ;;  %v670_v8 = vld [vmem:[#allocation3 + $0x48] sm:$0xff] }
 0x147   :  { %261 = vst.msk [vmem:[#allocation2 + $0x2] sm:$0x1] %vm259_vm2, %v252_v15  ;;  %v393_v23 = vpop.f32.mrf.mxu2  ;;  %v679_v6 = vld [vmem:[#allocation3 + $0x90] sm:$0xff]  ;;  %v684_v7 = vld [vmem:[#allocation3 + $0xb8] sm:$0xff]  ;;  %v674_v9 = vld [vmem:[#allocation3 + $0x68] sm:$0xff] }
 0x148   :  { %262 = vst.msk [vmem:[#allocation2 + $0x4] sm:$0x1] %vm259_vm2, %v253_v16  ;;  %v413_v24 = vpop.f32.mrf.mxu3  ;;  %v678_v10 = vld [vmem:[#allocation3 + $0x88] sm:$0xff]  ;;  %v683_v11 = vld [vmem:[#allocation3 + $0xb0] sm:$0xff]  ;;  %v669_v12 = vld [vmem:[#allocation3 + $0x40] sm:$0xff] }
 0x149   :  { %263 = vst.msk [vmem:[#allocation2 + $0x6] sm:$0x1] %vm259_vm2, %v254_v17  ;;  %v414_v26 = vadd.f32 %v413_v24, %v393_v23  ;;  %v673_v13 = vld [vmem:[#allocation3 + $0x60] sm:$0xff]  ;;  %v682_v15 = vld [vmem:[#allocation3 + $0xa8] sm:$0xff]  ;;  %v688_v16 = vld [vmem:[#allocation3 + $0xd8] sm:$0xff] }
 0x14a   :  { %264 = vst.msk [vmem:[#allocation2 + $0x8] sm:$0x1] %vm259_vm2, %v255_v19  ;;  %v677_v14 = vld [vmem:[#allocation3 + $0x80] sm:$0xff]  ;;  %v692_v18 = vld [vmem:[#allocation3 + $0xf8] sm:$0xff]  ;;  %v687_v19 = vld [vmem:[#allocation3 + $0xd0] sm:$0xff] }
 0x14b   :  { %265 = vst.msk [vmem:[#allocation2 + $0xa] sm:$0x1] %vm259_vm2, %v256_v20  ;;  %v425_v31 = vrot.slane %v414_v26, 1  ;;  %v426_v32 = vrot.slane %v414_v26, 2  ;;  %v427_v33 = vrot.slane %v414_v26, 3  ;;  %v428_v34 = vrot.slane %v414_v26, 4 }
 0x14c   :  { %266 = vst.msk [vmem:[#allocation2 + $0xc] sm:$0x1] %vm259_vm2, %v257_v21  ;;  %v429_v36 = vrot.slane %v414_v26, 5  ;;  %v430_v37 = vrot.slane %v414_v26, 6  ;;  %v440_v38 = vadd.f32 %v416_v25, %v414_v26  ;;  %v431_v40 = vrot.slane %v414_v26, 7  ;;  %v681_v17 = vld [vmem:[#allocation3 + $0xa0] sm:$0xff] }
 0x14d   :  { %267 = vst.msk [vmem:[#allocation2 + $0xe] sm:$0x1] %vm259_vm2, %v258_v22  ;;  %v441_v41 = vadd.f32 %v425_v31, %v417_v27  ;;  %v442_v42 = vadd.f32 %v426_v32, %v418_v28  ;;  %v443_v43 = vadd.f32 %v427_v33, %v419_v29  ;;  %v444_v45 = vadd.f32 %v428_v34, %v420_v30  ;;  %v691_v20 = vld [vmem:[#allocation3 + $0xf0] sm:$0xff]  ;;  %v686_v21 = vld [vmem:[#allocation3 + $0xc8] sm:$0xff]  ;;  %v685_v23 = vld [vmem:[#allocation3 + $0xc0] sm:$0xff] }
 0x14e   :  { %448 = vst.msk [vmem:[#allocation2 + $0x1] sm:$0x1] %vm259_vm2, %v440_v38  ;;  %v445_v46 = vadd.f32 %v429_v36, %v421_v35  ;;  %v446_v47 = vadd.f32 %v430_v37, %v422_v39  ;;  %v447_v48 = vadd.f32 %v431_v40, %v423_v44  ;;  %v690_v22 = vld [vmem:[#allocation3 + $0xe8] sm:$0xff]  ;;  %v689_v24 = vld [vmem:[#allocation3 + $0xe0] sm:$0xff] }
 0x14f   :  { %449 = vst.msk [vmem:[#allocation2 + $0x3] sm:$0x1] %vm259_vm2, %v441_v41  ;;  %v947_v25 = vld [vmem:[%s1163_s4] ss:$0 sm:$0xff] }
 0x150   :  { %450 = vst.msk [vmem:[#allocation2 + $0x5] sm:$0x1] %vm259_vm2, %v442_v42 }
 0x151   :  { %451 = vst.msk [vmem:[#allocation2 + $0x7] sm:$0x1] %vm259_vm2, %v443_v43 }
 0x152   :  { %452 = vst.msk [vmem:[#allocation2 + $0x9] sm:$0x1] %vm259_vm2, %v444_v45 }
 0x153   :  { %453 = vst.msk [vmem:[#allocation2 + $0xb] sm:$0x1] %vm259_vm2, %v445_v46 }
 0x154   :  { %454 = vst.msk [vmem:[#allocation2 + $0xd] sm:$0x1] %vm259_vm2, %v446_v47 }
 0x155   :  { %v459_v53 = vld [vmem:[#allocation2] sm:$0x3]  ;;  %455 = vst.msk [vmem:[#allocation2 + $0xf] sm:$0x1] %vm259_vm2, %v447_v48 }
 0x156   :  { %910 = vmatmul.msk.f32.vlgmr.msrb.gmra.mxu0 %vm472_vm3, %v459_v53  ;;  %v460_v56 = vld [vmem:[#allocation2 + $0x2] sm:$0x3] }
 0x157   :  { %912 = vmatmul.msk.f32.vlgmr.msrb.gmra.mxu1 %vm472_vm3, %v460_v56  ;;  %v461_v58 = vld [vmem:[#allocation2 + $0x4] sm:$0x3]  ;;  %709 = vmatpush.msrb.mxu0 %v664_v51 }
 0x158   :  { %914 = vmatmul.msk.f32.vlgmr.msrb.gmra.mxu2 %vm472_vm3, %v461_v58  ;;  %v462_v59 = vld [vmem:[#allocation2 + $0x6] sm:$0x3]  ;;  %732 = vmatpush.msrb.mxu1 %v668_v55 }
 0x159   :  { %916 = vmatmul.msk.f32.vlgmr.msrb.gmra.mxu3 %vm472_vm3, %v462_v59  ;;  %710 = vmatpush.msrb.mxu0 %v663_v57  ;;  %v463_v49 = vld [vmem:[#allocation2 + $0x8] sm:$0x3]  ;;  %v948_v59 = vld [vmem:[%s1165_s6] ss:$0 sm:$0xff] }
 0x15a   :  { %v464_v60 = vld [vmem:[#allocation2 + $0xa] sm:$0x3]  ;;  %733 = vmatpush.msrb.mxu1 %v667_v52  ;;  %755 = vmatpush.msrb.mxu2 %v672_v0 }
 0x15b   :  { %v465_v61 = vld [vmem:[#allocation2 + $0xc] sm:$0x3]  ;;  %711 = vmatpush.msrb.mxu0 %v662_v62  ;;  %778 = vmatpush.msrb.mxu3 %v676_v2 }
 0x15c   :  { %v466_v50 = vld [vmem:[#allocation2 + $0xe] sm:$0x3]  ;;  %734 = vmatpush.msrb.mxu1 %v666_v63  ;;  %756 = vmatpush.msrb.mxu2 %v671_v4 }
 0x15d   :  { %712 = vmatpush.msrb.mxu0 %v661_v54  ;;  %779 = vmatpush.msrb.mxu3 %v675_v5 }
 0x15e   :  { %918 = vmatmul.msk.f32.vlgmr.msra.gmra.mxu0 %vm472_vm3, %v463_v49  ;;  %735 = vmatpush.msrb.mxu1 %v665_v1 }
 0x15f   :  { %920 = vmatmul.msk.f32.vlgmr.msra.gmra.mxu1 %vm472_vm3, %v464_v60  ;;  %801 = vmatpush.msra.mxu0 %v680_v3 }
 0x160   :  { %922 = vmatmul.msk.f32.vlgmr.msra.gmra.mxu2 %vm472_vm3, %v465_v61  ;;  %824 = vmatpush.msra.mxu1 %v684_v7 }
 0x161   :  { %924 = vmatmul.msk.f32.vlgmr.msra.gmra.mxu3 %vm472_vm3, %v466_v50  ;;  %802 = vmatpush.msra.mxu0 %v679_v6 }
 0x162   :  { %757 = vmatpush.msrb.mxu2 %v670_v8  ;;  %780 = vmatpush.msrb.mxu3 %v674_v9 }
 0x163   :  { %803 = vmatpush.msra.mxu0 %v678_v10  ;;  %825 = vmatpush.msra.mxu1 %v683_v11 }
 0x164   :  { %758 = vmatpush.msrb.mxu2 %v669_v12  ;;  %781 = vmatpush.msrb.mxu3 %v673_v13 }
 0x165   :  { %804 = vmatpush.msra.mxu0 %v677_v14  ;;  %826 = vmatpush.msra.mxu1 %v682_v15 }
 0x166   :  { %847 = vmatpush.msra.mxu2 %v688_v16  ;;  %870 = vmatpush.msra.mxu3 %v692_v18 }
 0x167   :  { %827 = vmatpush.msra.mxu1 %v681_v17 }
 0x168   :  { %848 = vmatpush.msra.mxu2 %v687_v19  ;;  %871 = vmatpush.msra.mxu3 %v691_v20 }
 0x16a   :  { %849 = vmatpush.msra.mxu2 %v686_v21  ;;  %872 = vmatpush.msra.mxu3 %v690_v22 }
 0x16c   :  { %850 = vmatpush.msra.mxu2 %v685_v23  ;;  %873 = vmatpush.msra.mxu3 %v689_v24 }
 0x1d3   :  { %v497_v26 = vpop.f32.mrf.mxu0 }
 0x1d4   :  { %v498_v27 = vadd.f32 %v947_v25, %v497_v26  ;;  %v520_v28 = vpop.f32.mrf.mxu1 }
 0x1d5   :  { %v521_v29 = vadd.f32 %v947_v25, %v520_v28 }
 0x1d6   :  { %925 = vmatmul.msk.f32.vlgmr.msrb.gmra.mxu0 %vm693_vm4, %v498_v27 }
 0x1d7   :  { %926 = vmatmul.msk.f32.vlgmr.msrb.gmra.mxu1 %vm693_vm4, %v521_v29 }
 0x1db   :  { %v543_v30 = vpop.f32.mrf.mxu2  ;;  %v589_v31 = vpop.f32.mrf.mxu0 }
 0x1dc   :  { %v544_v32 = vadd.f32 %v947_v25, %v543_v30  ;;  %v566_v33 = vpop.f32.mrf.mxu3  ;;  %v590_v34 = vadd.f32 %v947_v25, %v589_v31  ;;  %v612_v35 = vpop.f32.mrf.mxu1 }
 0x1dd   :  { %v567_v36 = vadd.f32 %v947_v25, %v566_v33  ;;  %v613_v37 = vadd.f32 %v947_v25, %v612_v35 }
 0x1de   :  { %927 = vmatmul.msk.f32.vlgmr.msrb.gmra.mxu2 %vm693_vm4, %v544_v32  ;;  %929 = vmatmul.msk.f32.vlgmr.msra.gmra.mxu0 %vm693_vm4, %v590_v34 }
 0x1df   :  { %928 = vmatmul.msk.f32.vlgmr.msrb.gmra.mxu3 %vm693_vm4, %v567_v36  ;;  %930 = vmatmul.msk.f32.vlgmr.msra.gmra.mxu1 %vm693_vm4, %v613_v37 }
 0x1e3   :  { %v635_v38 = vpop.f32.mrf.mxu2 }
 0x1e4   :  { %v636_v39 = vadd.f32 %v947_v25, %v635_v38  ;;  %v658_v40 = vpop.f32.mrf.mxu3 }
 0x1e5   :  { %v659_v41 = vadd.f32 %v947_v25, %v658_v40 }
 0x1e6   :  { %931 = vmatmul.msk.f32.vlgmr.msra.gmra.mxu2 %vm693_vm4, %v636_v39 }
 0x1e7   :  { %932 = vmatmul.msk.f32.vlgmr.msra.gmra.mxu3 %vm693_vm4, %v659_v41 }
 0x253   :  { %v714_v42 = vpop.f32.mrf.mxu0 }
 0x254   :  { %v737_v43 = vpop.f32.mrf.mxu1 }
 0x255   :  { %v878_v44 = vadd.f32 %v737_v43, %v714_v42 }
 0x25b   :  { %v806_v51 = vpop.f32.mrf.mxu0 }
 0x25c   :  { %v829_v55 = vpop.f32.mrf.mxu1 }
 0x261   :  { %v760_v45 = vpop.f32.mrf.mxu2 }
 0x262   :  { %v879_v46 = vadd.f32 %v878_v44, %v760_v45  ;;  %v783_v47 = vpop.f32.mrf.mxu3 }
 0x264   :  { %v880_v48 = vadd.f32 %v879_v46, %v783_v47 }
 0x266   :  { %v881_v53 = vadd.f32 %v880_v48, %v806_v51 }
 0x268   :  { %v882_v56 = vadd.f32 %v881_v53, %v829_v55 }
 0x269   :  { %v852_v57 = vpop.f32.mrf.mxu2 }
 0x26a   :  { %v883_v58 = vadd.f32 %v882_v56, %v852_v57  ;;  %v875_v49 = vpop.f32.mrf.mxu3 }
 0x26c   :  { %v884_v60 = vadd.f32 %v883_v58, %v875_v49 }
 0x26e   :  { %v889_v61 = vadd.f32 %v948_v59, %v884_v60 }
 0x270   :  { %890 = vst [vmem:[#allocation6] sm:$0x3] %v889_v61 }
 0x271   :  { %901 = dma.vmem_to_hbm [thread:$0]  %s897_s17, 32, %s899_s20, [#allocation5]  }
 0x272   :  { %1015 = dma.done.wait [#allocation5], 32  }
 0x273   :  { %1016 = vsyncadd [#allocation5], 4294967264 }
 0x274   :  { %906 = vsyncpa [#allocation4], 1 }
 0x275   :  { %907 = vsyncpa [#allocation5], 1 }

</bundles_post_ra>
